<compile_context>
chip_gen: v6e
topology: v6e:2x2x1
jax: 0.10.0
libtpu: 0.0.40
codegen_flags: <defaults>
</compile_context>

<pallas_src>
import functools

import jax
import jax.numpy as jnp
from jax import lax
from jax.experimental import pallas as pl
from jax.experimental.pallas import tpu as pltpu


# ---------------------------------------------------------------------------
# Pallas kernel: fused 1x1-conv (MXU matmul) + bias + length mask
# ---------------------------------------------------------------------------
def _proj_mask_kernel(lens_ref, xt_ref, w_ref, b_ref, o_ref):
    # lens_ref: (B,)        int32 in SMEM (scalar-prefetched sequence lengths)
    # xt_ref  : (1, Hp, Tt) bf16  -- channels-major input tile
    # w_ref   : (Np, Hp)    bf16  -- projection weight (2*out_ch, hidden), VMEM-resident
    # b_ref   : (Np, 1)     f32   -- projection bias
    # o_ref   : (1, Np, Tt) bf16  -- masked stats tile, PyTorch (B, C, T) layout
    b_i = pl.program_id(0)
    t_i = pl.program_id(1)
    tt = o_ref.shape[2]

    # MXU matmul with fp32 accumulation; result is already channels-major.
    y = jnp.dot(w_ref[...], xt_ref[0], preferred_element_type=jnp.float32)  # (Np, Tt)
    y = y + b_ref[...]                                                       # bias (Np, 1)

    # Length mask built in-kernel from the global time index (no HBM mask tensor).
    t_idx = t_i * tt + lax.broadcasted_iota(jnp.int32, (1, tt), 1)           # (1, Tt)
    mask = (t_idx < lens_ref[b_i]).astype(jnp.float32)
    o_ref[0] = (y * mask).astype(o_ref.dtype)


def _pad_axis(a, axis, target):
    pad = target - a.shape[axis]
    if pad == 0:
        return a
    widths = [(0, 0)] * a.ndim
    widths[axis] = (0, pad)
    return jnp.pad(a, widths)


def _pick_time_tile(T, max_t_tile=512):
    """Largest tile (multiple of 128, <= max) that minimizes total padded length."""
    t128 = pl.cdiv(T, 128) * 128
    best_tile, best_tp = t128, t128
    for cand in (512, 384, 256, 128):
        if cand > max_t_tile or cand > t128:
            continue
        tp = pl.cdiv(T, cand) * cand
        if tp < best_tp or (tp == best_tp and cand > best_tile):
            best_tile, best_tp = cand, tp
    return best_tile, best_tp


def proj_mask(x_t, w, bias, lengths, *, max_t_tile=512):
    """Fused masked 1x1 conv.

    x_t     : (B, H, T)  channels-major input (cast to bf16 internally)
    w       : (N, H)     Conv1d kernel-size-1 weight (kernel dim squeezed), N = 2*out_ch
    bias    : (N,)
    lengths : (B,) int   valid time steps per batch element
    returns : (B, N, T)  bf16 stats, already multiplied by the length mask
    """
    B, H, T = x_t.shape
    N = w.shape[0]

    Hp = pl.cdiv(H, 128) * 128              # contraction dim: lane aligned
    Np = pl.cdiv(N, 128) * 128              # output channels: sublane-tile aligned
    t_tile, Tp = _pick_time_tile(T, max_t_tile)  # time: lane-dense store tiles

    xt_p = _pad_axis(_pad_axis(x_t.astype(jnp.bfloat16), 1, Hp), 2, Tp)   # (B, Hp, Tp)
    w_p = _pad_axis(_pad_axis(w.astype(jnp.bfloat16), 0, Np), 1, Hp)      # (Np, Hp)
    b_p = _pad_axis(bias.astype(jnp.float32)[:, None], 0, Np)             # (Np, 1)
    lens = lengths.astype(jnp.int32)

    cost = pl.CostEstimate(
        flops=2 * B * Np * Hp * Tp,
        transcendentals=0,
        bytes_accessed=(B * Hp * Tp * 2 + Np * Hp * 2 + Np * 4 + B * Np * Tp * 2),
    )

    stats = pl.pallas_call(
        _proj_mask_kernel,
        out_shape=jax.ShapeDtypeStruct((B, Np, Tp), jnp.bfloat16),
        grid_spec=pltpu.PrefetchScalarGridSpec(
            num_scalar_prefetch=1,
            grid=(B, Tp // t_tile),
            in_specs=[
                pl.BlockSpec((1, Hp, t_tile), lambda b, t, lens: (b, 0, t)),
                pl.BlockSpec((Np, Hp), lambda b, t, lens: (0, 0)),   # VMEM-resident
                pl.BlockSpec((Np, 1), lambda b, t, lens: (0, 0)),    # VMEM-resident
            ],
            out_specs=pl.BlockSpec((1, Np, t_tile), lambda b, t, lens: (b, 0, t)),
        ),
        compiler_params=pltpu.CompilerParams(
            dimension_semantics=("parallel", "parallel")),
        cost_estimate=cost,
    )(lens, xt_p, w_p, b_p)
    return stats[:, :N, :T]


# ---------------------------------------------------------------------------
# TextEncoder forward (matches the PyTorch module semantics)
# ---------------------------------------------------------------------------
def text_encoder_forward(params, x, x_lengths, *, out_channels):
    """x: (B, T, hidden)  x_lengths: (B,)  ->  (x_t, m, logs, x_mask), all bf16.

    x_t   : (B, hidden, T)   == torch.transpose(x.half(), 1, -1)
    m     : (B, out_ch, T)
    logs  : (B, out_ch, T)
    x_mask: (B, 1, T)
    """
    B, T, _ = x.shape
    # torch .half() -> bf16 (TPU-native half precision); this transpose feeds both the
    # module output x_t and the kernel (channels-major input), so it is done only once.
    x_t = jnp.transpose(x.astype(jnp.bfloat16), (0, 2, 1))                       # (B, H, T)
    x_mask = (jnp.arange(T)[None, :] < x_lengths[:, None])[:, None, :].astype(jnp.bfloat16)

    w = params["proj_w"][..., 0]   # (2*out_ch, H)  Conv1d weight, kernel dim squeezed
    b = params["proj_b"]           # (2*out_ch,)
    stats = proj_mask(x_t, w, b, x_lengths)                                      # (B, 2*out, T)
    m = stats[:, :out_channels, :]
    logs = stats[:, out_channels:, :]
    return x_t, m, logs, x_mask


def init_text_encoder_params(key, out_channels, hidden_channels, scale=0.05):
    k1, k2 = jax.random.split(key)
    w = scale * jax.random.normal(k1, (out_channels * 2, hidden_channels, 1), jnp.float32)
    b = scale * jax.random.normal(k2, (out_channels * 2,), jnp.float32)
    return {"proj_w": w, "proj_b": b}


# ---------------------------------------------------------------------------
if __name__ == "__main__":
    key = jax.random.PRNGKey(0)
    k_param, k_x = jax.random.split(key)

    out_channels, hidden_channels = 96, 192
    B, T = 2, 80
    params = init_text_encoder_params(k_param, out_channels, hidden_channels)
    x = jax.random.normal(k_x, (B, T, hidden_channels), jnp.float32)
    x_lengths = jnp.array([80, 53], dtype=jnp.int32)

    fwd = jax.jit(functools.partial(text_encoder_forward, out_channels=out_channels))
    x_t, m, logs, x_mask = jax.block_until_ready(fwd(params, x, x_lengths))

    # Shape checks (PyTorch layouts).
    assert x_t.shape == (B, hidden_channels, T)
    assert m.shape == (B, out_channels, T) and logs.shape == (B, out_channels, T)
    assert x_mask.shape == (B, 1, T)

    # Numerical check vs a plain-JAX reference (same bf16 operands, fp32 math).
    w2d = params["proj_w"][..., 0].astype(jnp.bfloat16).astype(jnp.float32)
    xtf = jnp.transpose(x.astype(jnp.bfloat16).astype(jnp.float32), (0, 2, 1))
    ref = jnp.einsum("nh,bht->bnt", w2d, xtf) + params["proj_b"][:, None]
    mask_f = (jnp.arange(T)[None, :] < x_lengths[:, None]).astype(jnp.float32)[:, None, :]
    ref = ref * mask_f
    got = jnp.concatenate([m, logs], axis=1).astype(jnp.float32)
    err = float(jnp.max(jnp.abs(got - ref)))
    assert err < 3e-2, f"max abs err {err}"
    # Region beyond each sequence length must be exactly zero (masked in-kernel).
    assert bool(jnp.all(m[1, :, 53:] == 0)) and bool(jnp.all(logs[1, :, 53:] == 0))

    print("KERNEL_OK")
</pallas_src>

<mosaic_0001>
module attributes {stable_mosaic.version = 11 : i64} {
  func.func @_proj_mask_kernel(%arg0: i32, %arg1: i32, %arg2: memref<2xi32, #tpu.memory_space<smem>>, %arg3: memref<1x256x128xbf16, #tpu.memory_space<vmem>>, %arg4: memref<256x256xbf16, #tpu.memory_space<vmem>>, %arg5: memref<256x1xf32, #tpu.memory_space<vmem>>, %arg6: memref<1x256x128xbf16, #tpu.memory_space<vmem>>) attributes {dimension_semantics = [#tpu.dimension_semantics<parallel>, #tpu.dimension_semantics<parallel>], iteration_bounds = array<i64: 2, 1>, scalar_prefetch = 1 : i64, scratch_operands = 0 : i64, tpu.core_type = #tpu.core_type<tc>, window_params = [{transform_indices = @transform_0, window_bounds = array<i64: 1, 256, 128>}, {pipeline_mode = #tpu.pipeline_mode<synchronous>, transform_indices = @transform_1, window_bounds = array<i64: 256, 256>}, {pipeline_mode = #tpu.pipeline_mode<synchronous>, transform_indices = @transform_2, window_bounds = array<i64: 256, 1>}, {transform_indices = @transform_3, window_bounds = array<i64: 1, 256, 128>}]} {
    %c0 = arith.constant 0 : index
    %c0_0 = arith.constant 0 : index
    %0 = vector.load %arg4[%c0, %c0_0] : memref<256x256xbf16, #tpu.memory_space<vmem>>, vector<256x256xbf16>
    %c0_1 = arith.constant 0 : index
    %c0_2 = arith.constant 0 : index
    %c0_3 = arith.constant 0 : index
    %1 = vector.load %arg3[%c0_1, %c0_2, %c0_3] : memref<1x256x128xbf16, #tpu.memory_space<vmem>>, vector<1x256x128xbf16>
    %2 = vector.shape_cast %1 : vector<1x256x128xbf16> to vector<256x128xbf16>
    %cst = arith.constant dense<0.000000e+00> : vector<256x128xf32>
    %3 = tpu.matmul %0, %2, %cst {dimension_numbers = #tpu.dot_dimension_numbers<[1], [0], [0], [1], [0, 0, 1, 1], [], []>} : vector<256x256xbf16>, vector<256x128xbf16>, vector<256x128xf32> -> vector<256x128xf32>
    %c0_4 = arith.constant 0 : index
    %c0_5 = arith.constant 0 : index
    %4 = vector.load %arg5[%c0_4, %c0_5] : memref<256x1xf32, #tpu.memory_space<vmem>>, vector<256x1xf32>
    %5 = vector.broadcast %4 : vector<256x1xf32> to vector<256x128xf32>
    %6 = arith.addf %3, %5 : vector<256x128xf32>
    %c128_i32 = arith.constant 128 : i32
    %7 = arith.muli %arg1, %c128_i32 : i32
    %8 = tpu.iota {dimensions = array<i32: 1>} : vector<1x128xi32>
    %9 = vector.broadcast %7 : i32 to vector<1x128xi32>
    %10 = arith.addi %9, %8 : vector<1x128xi32>
    %11 = arith.index_cast %arg0 : i32 to index
    %12 = memref.load %arg2[%11] : memref<2xi32, #tpu.memory_space<smem>>
    %13 = vector.broadcast %12 : i32 to vector<1x128xi32>
    %14 = arith.cmpi slt, %10, %13 : vector<1x128xi32>
    %15 = arith.extui %14 : vector<1x128xi1> to vector<1x128xi32>
    %16 = arith.sitofp %15 : vector<1x128xi32> to vector<1x128xf32>
    %17 = vector.broadcast %16 : vector<1x128xf32> to vector<256x128xf32>
    %18 = arith.mulf %6, %17 : vector<256x128xf32>
    %19 = arith.truncf %18 : vector<256x128xf32> to vector<256x128xbf16>
    %c0_6 = arith.constant 0 : index
    %c0_7 = arith.constant 0 : index
    %c0_8 = arith.constant 0 : index
    %20 = vector.load %arg6[%c0_6, %c0_7, %c0_8] : memref<1x256x128xbf16, #tpu.memory_space<vmem>>, vector<1x256x128xbf16>
    %21 = vector.shape_cast %20 : vector<1x256x128xbf16> to vector<256x128xbf16>
    %22 = vector.shape_cast %19 : vector<256x128xbf16> to vector<1x256x128xbf16>
    tpu.vector_store %arg6[%c0_6, %c0_7, %c0_8], %22 {strides = array<i32>} : memref<1x256x128xbf16, #tpu.memory_space<vmem>>, vector<1x256x128xbf16>,
    return
  }
  func.func @transform_0(%arg0: i32, %arg1: i32, %arg2: memref<2xi32, #tpu.memory_space<smem>>) -> (i32, i32, i32) {
    %c0_i32 = arith.constant 0 : i32
    %c0_i32_0 = arith.constant 0 : i32
    return %arg0, %c0_i32, %arg1 : i32, i32, i32
  }
  func.func @transform_1(%arg0: i32, %arg1: i32, %arg2: memref<2xi32, #tpu.memory_space<smem>>) -> (i32, i32) {
    %c0_i32 = arith.constant 0 : i32
    %c0_i32_0 = arith.constant 0 : i32
    %c0_i32_1 = arith.constant 0 : i32
    return %c0_i32, %c0_i32_0 : i32, i32
  }
  func.func @transform_2(%arg0: i32, %arg1: i32, %arg2: memref<2xi32, #tpu.memory_space<smem>>) -> (i32, i32) {
    %c0_i32 = arith.constant 0 : i32
    %c0_i32_0 = arith.constant 0 : i32
    %c0_i32_1 = arith.constant 0 : i32
    return %c0_i32, %c0_i32_0 : i32, i32
  }
  func.func @transform_3(%arg0: i32, %arg1: i32, %arg2: memref<2xi32, #tpu.memory_space<smem>>) -> (i32, i32, i32) {
    %c0_i32 = arith.constant 0 : i32
    %c0_i32_0 = arith.constant 0 : i32
    return %arg0, %c0_i32, %arg1 : i32, i32, i32
  }
}

</mosaic_0001>

<bundles_post_ra>
// kernel: text_encoder_forward.1
= control target key start
LH: loop header
LB: loop body
LE: loop exit
PB: predicated region body
PF: predicated region fallthrough
CT: control target
= control target key end

     0   :  { %s2025_s0 = inlined_call_operand.vmem [shape: s32[2], index: 0, kind: input, shape index: {}]   ;;  %s2026_s1 = inlined_call_operand.vmem [shape: bf16[2,256,128], index: 1, kind: input, shape index: {}]   ;;  %s2027_s2 = inlined_call_operand.vmem [shape: bf16[256,256], index: 2, kind: input, shape index: {}]   ;;  %s2028_s3 = inlined_call_operand.vmem [shape: f32[256,1], index: 3, kind: input, shape index: {}]   ;;  %s2029_s4 = inlined_call_operand.vmem [shape: bf16[2,256,128], index: 4, kind: output, shape index: {}]  }
   0x1   :  { %s9_s17 = sshll.u32 %s2025_s0, 4  ;;  %s10_s17 = int_to_ptr.vmem [resolvable:$true] %s9_s17 }
   0x2   :  { %s1610_s18 = scalar_lea.vmem %s10_s17, 16  ;;  %p1615_p1 = scmp.lt.s32.totalorder %s10_s17, %s10_s17 }
   0x3   :  { %p1611_p0 = scmp.ne.s32.totalorder %s10_s17, %s1610_s18  ;;  %p1616_p2 = scmp.lt.s32.totalorder %s1610_s18, %s1610_s18 }
   0x5   :  { %p1617_p3 = por %p1616_p2, %p1615_p1 }
   0x7   :  { %p1618_p4 = pnand %p1617_p3, %p1611_p0 }
   0x9   :  { %1621 = shalt.err (!%p1618_p4)  }
   0xa   :  { %s1648_s19 = smov [#allocation3]  }
   0xb   :  { %12 = dma.vmem_to_smem %s10_s17, 16, %s1648_s19, [#allocation2] }
   0xc   :  { %1634 = dma.done.wait [#allocation2], 16 }
   0xd   :  { %1635 = vsyncadd [#allocation2], 4294967280 }
   0xe   :  { %14 = sfence }
   0xf   :  { %s1679_s20 = smov 0   ;;  %s1681_s21 = smov 0  }
  0x10   :  { %s1683_s22 = smov 0  }
  0x11 LB: > { %s32_s0 = sadd.s32 1, %s1642_s21  ;;  %p1172_p5 = scmp.ge.s32.totalorder %s1646_s22, 1  ;;  %s1646_s22 = sphi %s1683_s22, %s20_s22   ;;  %s1642_s21 = sphi %s1681_s21, %s2031_s21   ;;  %s1638_s20 = sphi %s1679_s20, %s2030_s20  }
  0x12   : > { %p34_p6 = scmp.ge.s32.totalorder %s32_s0, 2  ;;  %p163_p7 = scmp.lt.s32.totalorder %s1646_s22, 3 }
  0x14   : > { %s2033_s0 = smov (%p34_p6, %s32_s0), 0  ;;  %p164_p8 = pnand %p1172_p5, %p163_p7 }
  0x15   : > { %p193_p9 = scmp.lt.s32.totalorder (!%p164_p8), %s1638_s20, 1  ;;  %s888_s30 = sld [smem:[#allocation3 + %s1638_s20]] (!%p164_p8) }
  0x16   : > { %167 = sbr.rel (%p164_p8) target bundleno = 328 (0x148), region = 32 }
  0x1b   : > { %v1564_v0 = vld [vmem:[%s2027_s2 + $0x4] ss:$8 sps:$4 sm:$0xff]   ;;  %v1649_v1 = vmov 0   ;;  %s1704_s25 = scalar_select %p193_p9, %s1638_s20, 1  ;;  %v276_v3 = vld [vmem:[%s2028_s3 + $0x10] sm:$0xff]  ;;  %v277_v16 = vld [vmem:[%s2028_s3 + $0x18] sm:$0xff] }
  0x1c   : > { %1545 = vset.pattern.permute.xlu1 %v1649_v1  ;;  %1544 = vset.pattern.permute.xlu0 %v1649_v1  ;;  %v1567_v2 = vld [vmem:[%s2027_s2 + $0x84] ss:$8 sps:$4 sm:$0xff]   ;;  %v281_v24 = vld [vmem:[%s2028_s3 + $0x38] sm:$0xff]  ;;  %v280_v25 = vld [vmem:[%s2028_s3 + $0x30] sm:$0xff] }
  0x1d   : > { %754 = vmatprep.mubr.bf16.mxu0 %v1564_v0  ;;  %s1260_s28 = sshll.u32 %s1704_s25, 7  ;;  %818 = vmatprep.mubr.bf16.mxu1 %v1567_v2  ;;  %v274_v4 = vld [vmem:[%s2028_s3] sm:$0xff]  ;;  %v275_v18 = vld [vmem:[%s2028_s3 + $0x8] sm:$0xff]  ;;  %v1568_v31 = vld [vmem:[%s2027_s2 + $0x14] ss:$8 sps:$4 sm:$0xff]  }
  0x1e   : > { %s1715_s5 = scalar_lea.vmem %s2026_s1, %s1260_s28  ;;  %318 = vperm.xlu1 %1545, %v276_v3   ;;  %308 = vperm.xlu0 %1544, %v274_v4   ;;  %v279_v20 = vld [vmem:[%s2028_s3 + $0x28] sm:$0xff]  ;;  %v278_v21 = vld [vmem:[%s2028_s3 + $0x20] sm:$0xff]  ;;  %v1570_v32 = vld [vmem:[%s2027_s2 + $0x94] ss:$8 sps:$4 sm:$0xff]   ;;  %s1957_s7 = scalar_lea.vmem %s2029_s4, %s1260_s28 }
  0x1f   : > { %v1546_v5 = vld [vmem:[%s1715_s5 + $0x78] sm:$0xff]   ;;  %v1548_v7 = vld [vmem:[%s1715_s5 + $0x70] sm:$0xff]   ;;  %v1550_v9 = vld [vmem:[%s1715_s5 + $0x68] sm:$0xff]  }
  0x20   : > { %v1547_v6 = vld [vmem:[%s1715_s5 + $0x38] sm:$0xff]   ;;  %1389 = vmatprep.subr.bf16.mxu0 %v1546_v5  ;;  %1501 = vmatprep.subr.bf16.mxu1 %v1546_v5  ;;  %v1549_v8 = vld [vmem:[%s1715_s5 + $0x30] sm:$0xff]   ;;  %v1551_v10 = vld [vmem:[%s1715_s5 + $0x28] sm:$0xff]  }
  0x21   : > { %1390 = vmatpush3.bf16.msra.mxu0 %v1547_v6  ;;  %1509 = vmatpush3.bf16.msra.mxu1 %v1547_v6  ;;  %v1552_v11 = vld [vmem:[%s1715_s5 + $0x60] sm:$0xff]   ;;  %v1554_v13 = vld [vmem:[%s1715_s5 + $0x58] sm:$0xff]   ;;  %v1556_v15 = vld [vmem:[%s1715_s5 + $0x50] sm:$0xff]  }
  0x22   : > { %1391 = vmatprep.subr.bf16.mxu0 %v1548_v7  ;;  %1502 = vmatprep.subr.bf16.mxu1 %v1548_v7  ;;  %v1553_v12 = vld [vmem:[%s1715_s5 + $0x20] sm:$0xff]   ;;  %v1555_v14 = vld [vmem:[%s1715_s5 + $0x18] sm:$0xff]   ;;  %v1557_v17 = vld [vmem:[%s1715_s5 + $0x10] sm:$0xff]  }
  0x23   : > { %v1558_v19 = vld [vmem:[%s1715_s5 + $0x48] sm:$0xff]   ;;  %323 = vperm.xlu1 %1545, %v277_v16   ;;  %313 = vperm.xlu0 %1544, %v275_v18   ;;  %v1560_v23 = vld [vmem:[%s1715_s5 + $0x40] sm:$0xff]   ;;  %v285_v33 = vld [vmem:[%s2028_s3 + $0x58] sm:$0xff] }
  0x24   : > { %v1559_v22 = vld [vmem:[%s1715_s5 + $0x8] sm:$0xff]   ;;  %v1561_v26 = vld [vmem:[%s1715_s5] sm:$0xff]   ;;  %v284_v34 = vld [vmem:[%s2028_s3 + $0x50] sm:$0xff] }
  0x25   : > { %1392 = vmatpush3.bf16.msra.mxu0 %v1549_v8  ;;  %1510 = vmatpush3.bf16.msra.mxu1 %v1549_v8  ;;  %v1562_v27 = vld [vmem:[%s2027_s2] ss:$8 sps:$4 sm:$0xff]   ;;  %v1572_v35 = vld [vmem:[%s2027_s2 + $0x10] ss:$8 sps:$4 sm:$0xff]   ;;  %v1574_v39 = vld [vmem:[%s2027_s2 + $0x24] ss:$8 sps:$4 sm:$0xff]  }
  0x26   : > { %1393 = vmatprep.subr.bf16.mxu0 %v1550_v9  ;;  %1503 = vmatprep.subr.bf16.mxu1 %v1550_v9  ;;  %v1565_v28 = vld [vmem:[%s2027_s2 + $0x80] ss:$8 sps:$4 sm:$0xff]   ;;  %v1573_v36 = vld [vmem:[%s2027_s2 + $0x90] ss:$8 sps:$4 sm:$0xff]   ;;  %v1576_v40 = vld [vmem:[%s2027_s2 + $0xa4] ss:$8 sps:$4 sm:$0xff]  }
  0x27   : > { %333 = vperm.xlu1 %1545, %v279_v20   ;;  %328 = vperm.xlu0 %1544, %v278_v21   ;;  %v283_v29 = vld [vmem:[%s2028_s3 + $0x48] sm:$0xff]  ;;  %v282_v30 = vld [vmem:[%s2028_s3 + $0x40] sm:$0xff]  ;;  %v289_v41 = vld [vmem:[%s2028_s3 + $0x78] sm:$0xff] }
  0x28   : > { %v287_v37 = vld [vmem:[%s2028_s3 + $0x68] sm:$0xff]  ;;  %v286_v38 = vld [vmem:[%s2028_s3 + $0x60] sm:$0xff]  ;;  %v288_v42 = vld [vmem:[%s2028_s3 + $0x70] sm:$0xff] }
  0x29   : > { %1394 = vmatpush3.bf16.msra.mxu0 %v1551_v10  ;;  %1511 = vmatpush3.bf16.msra.mxu1 %v1551_v10  ;;  %v1578_v43 = vld [vmem:[%s2027_s2 + $0x20] ss:$8 sps:$4 sm:$0xff]   ;;  %v1580_v47 = vld [vmem:[%s2027_s2 + $0x34] ss:$8 sps:$4 sm:$0xff]   ;;  %v1584_v51 = vld [vmem:[%s2027_s2 + $0x30] ss:$8 sps:$4 sm:$0xff]  }
  0x2a   : > { %1395 = vmatprep.subr.bf16.mxu0 %v1552_v11  ;;  %1504 = vmatprep.subr.bf16.mxu1 %v1552_v11  ;;  %v1579_v44 = vld [vmem:[%s2027_s2 + $0xa0] ss:$8 sps:$4 sm:$0xff]   ;;  %v1582_v48 = vld [vmem:[%s2027_s2 + $0xb4] ss:$8 sps:$4 sm:$0xff]   ;;  %v1585_v52 = vld [vmem:[%s2027_s2 + $0xb0] ss:$8 sps:$4 sm:$0xff]  }
  0x2b   : > { %343 = vperm.xlu1 %1545, %v281_v24   ;;  %338 = vperm.xlu0 %1544, %v280_v25   ;;  %v291_v45 = vld [vmem:[%s2028_s3 + $0x88] sm:$0xff]  ;;  %v290_v46 = vld [vmem:[%s2028_s3 + $0x80] sm:$0xff]  ;;  %v293_v49 = vld [vmem:[%s2028_s3 + $0x98] sm:$0xff] }
  0x2c   : > { %v292_v50 = vld [vmem:[%s2028_s3 + $0x90] sm:$0xff]  ;;  %v295_v53 = vld [vmem:[%s2028_s3 + $0xa8] sm:$0xff]  ;;  %v294_v54 = vld [vmem:[%s2028_s3 + $0xa0] sm:$0xff] }
  0x2d   : > { %1396 = vmatpush3.bf16.msra.mxu0 %v1553_v12  ;;  %1512 = vmatpush3.bf16.msra.mxu1 %v1553_v12  ;;  %v1586_v55 = vld [vmem:[%s2027_s2 + $0x44] ss:$8 sps:$4 sm:$0xff]   ;;  %v297_v57 = vld [vmem:[%s2028_s3 + $0xb8] sm:$0xff]  ;;  %v296_v58 = vld [vmem:[%s2028_s3 + $0xb0] sm:$0xff] }
  0x2e   : > { %1397 = vmatprep.subr.bf16.mxu0 %v1554_v13  ;;  %1505 = vmatprep.subr.bf16.mxu1 %v1554_v13  ;;  %v1588_v56 = vld [vmem:[%s2027_s2 + $0xc4] ss:$8 sps:$4 sm:$0xff]   ;;  %v1590_v59 = vld [vmem:[%s2027_s2 + $0x40] ss:$8 sps:$4 sm:$0xff]   ;;  %v1592_v63 = vld [vmem:[%s2027_s2 + $0x54] ss:$8 sps:$4 sm:$0xff]  }
  0x2f   : > { %353 = vperm.xlu1 %1545, %v283_v29   ;;  %348 = vperm.xlu0 %1544, %v282_v30   ;;  %v1591_v60 = vld [vmem:[%s2027_s2 + $0xc0] ss:$8 sps:$4 sm:$0xff]   ;;  %v1594_v0 = vld [vmem:[%s2027_s2 + $0xd4] ss:$8 sps:$4 sm:$0xff]   ;;  %v1596_v3 = vld [vmem:[%s2027_s2 + $0x50] ss:$8 sps:$4 sm:$0xff]  }
  0x30   : > { %v299_v61 = vld [vmem:[%s2028_s3 + $0xc8] sm:$0xff]  ;;  %v298_v62 = vld [vmem:[%s2028_s3 + $0xc0] sm:$0xff]  ;;  %v301_v1 = vld [vmem:[%s2028_s3 + $0xd8] sm:$0xff] }
  0x31   : > { %1398 = vmatpush3.bf16.msra.mxu0 %v1555_v14  ;;  %1513 = vmatpush3.bf16.msra.mxu1 %v1555_v14  ;;  %v300_v2 = vld [vmem:[%s2028_s3 + $0xd0] sm:$0xff]  ;;  %v303_v5 = vld [vmem:[%s2028_s3 + $0xe8] sm:$0xff]  ;;  %v302_v6 = vld [vmem:[%s2028_s3 + $0xe0] sm:$0xff] }
  0x32   : > { %1399 = vmatprep.subr.bf16.mxu0 %v1556_v15  ;;  %1506 = vmatprep.subr.bf16.mxu1 %v1556_v15  ;;  %v1597_v4 = vld [vmem:[%s2027_s2 + $0xd0] ss:$8 sps:$4 sm:$0xff]   ;;  %v1598_v7 = vld [vmem:[%s2027_s2 + $0x64] ss:$8 sps:$4 sm:$0xff]   ;;  %v1602_v11 = vld [vmem:[%s2027_s2 + $0x60] ss:$8 sps:$4 sm:$0xff]  }
  0x33   : > { %363 = vperm.xlu1 %1545, %v285_v33   ;;  %358 = vperm.xlu0 %1544, %v284_v34   ;;  %v1600_v8 = vld [vmem:[%s2027_s2 + $0xe4] ss:$8 sps:$4 sm:$0xff]   ;;  %v305_v9 = vld [vmem:[%s2028_s3 + $0xf8] sm:$0xff]  ;;  %v304_v10 = vld [vmem:[%s2028_s3 + $0xf0] sm:$0xff] }
  0x34   : > { %v1603_v12 = vld [vmem:[%s2027_s2 + $0xe0] ss:$8 sps:$4 sm:$0xff]   ;;  %v1604_v13 = vld [vmem:[%s2027_s2 + $0x74] ss:$8 sps:$4 sm:$0xff]   ;;  %v1608_v15 = vld [vmem:[%s2027_s2 + $0x70] ss:$8 sps:$4 sm:$0xff]  }
  0x35   : > { %1400 = vmatpush3.bf16.msra.mxu0 %v1557_v17  ;;  %1514 = vmatpush3.bf16.msra.mxu1 %v1557_v17  ;;  %v1606_v14 = vld [vmem:[%s2027_s2 + $0xf4] ss:$8 sps:$4 sm:$0xff]   ;;  %v1609_v16 = vld [vmem:[%s2027_s2 + $0xf0] ss:$8 sps:$4 sm:$0xff]  }
  0x36   : > { %1401 = vmatprep.subr.bf16.mxu0 %v1558_v19  ;;  %1507 = vmatprep.subr.bf16.mxu1 %v1558_v19 }
  0x37   : > { %373 = vperm.xlu1 %1545, %v287_v37   ;;  %368 = vperm.xlu0 %1544, %v286_v38   ;;  %v889_v37 = vstv %s888_s30 }
  0x39   : > { %1402 = vmatpush3.bf16.msra.mxu0 %v1559_v22  ;;  %1515 = vmatpush3.bf16.msra.mxu1 %v1559_v22 }
  0x3a   : > { %1403 = vmatprep.subr.bf16.mxu0 %v1560_v23  ;;  %1508 = vmatprep.subr.bf16.mxu1 %v1560_v23 }
  0x3b   : > { %383 = vperm.xlu1 %1545, %v289_v41   ;;  %378 = vperm.xlu0 %1544, %v288_v42  }
  0x3d   : > { %1404 = vmatpush3.bf16.msra.mxu0 %v1561_v26  ;;  %1516 = vmatpush3.bf16.msra.mxu1 %v1561_v26 }
  0x3f   : > { %393 = vperm.xlu1 %1545, %v291_v45   ;;  %388 = vperm.xlu0 %1544, %v290_v46  }
  0x40   : > { %755 = vmatmul.mubr.bf16.vlgmr.msra.gmra.mxu0 %v1562_v27  ;;  %819 = vmatmul.mubr.bf16.vlgmr.msra.gmra.mxu1 %v1565_v28 }
  0x41   : > { %762 = vmatprep.mubr.bf16.mxu0 %v1568_v31  ;;  %826 = vmatprep.mubr.bf16.mxu1 %v1570_v32  ;;  %v884_v31 = vlaneseq }
  0x43   : > { %403 = vperm.xlu1 %1545, %v293_v49   ;;  %398 = vperm.xlu0 %1544, %v292_v50   ;;  %v1650_v50 = vmov 0.0  }
  0x47   : > { %413 = vperm.xlu1 %1545, %v295_v53   ;;  %408 = vperm.xlu0 %1544, %v294_v54  }
  0x48   : > { %763 = vmatmul.mubr.bf16.gmra.mxu0 %v1572_v35  ;;  %827 = vmatmul.mubr.bf16.gmra.mxu1 %v1573_v36  ;;  %v885_v35 = vand.u32 127, %v884_v31 }
  0x49   : > { %770 = vmatprep.mubr.bf16.mxu0 %v1574_v39  ;;  %834 = vmatprep.mubr.bf16.mxu1 %v1576_v40 }
  0x4a   : > { %vm890_vm0 = vcmp.lt.s32.totalorder %v885_v35, %v889_v37 }
  0x4b   : > { %423 = vperm.xlu1 %1545, %v297_v57   ;;  %418 = vperm.xlu0 %1544, %v296_v58  }
  0x4f   : > { %433 = vperm.xlu1 %1545, %v299_v61   ;;  %428 = vperm.xlu0 %1544, %v298_v62  }
  0x50   : > { %771 = vmatmul.mubr.bf16.gmra.mxu0 %v1578_v43  ;;  %835 = vmatmul.mubr.bf16.gmra.mxu1 %v1579_v44 }
  0x51   : > { %778 = vmatprep.mubr.bf16.mxu0 %v1580_v47  ;;  %842 = vmatprep.mubr.bf16.mxu1 %v1582_v48 }
  0x53   : > { %443 = vperm.xlu1 %1545, %v301_v1   ;;  %438 = vperm.xlu0 %1544, %v300_v2  }
  0x57   : > { %453 = vperm.xlu1 %1545, %v303_v5   ;;  %448 = vperm.xlu0 %1544, %v302_v6  }
  0x58   : > { %779 = vmatmul.mubr.bf16.gmra.mxu0 %v1584_v51  ;;  %843 = vmatmul.mubr.bf16.gmra.mxu1 %v1585_v52  ;;  %v1946_v51 = vsel %vm890_vm0, 1.0, %v1650_v50 }
  0x59   : > { %786 = vmatprep.mubr.bf16.mxu0 %v1586_v55  ;;  %850 = vmatprep.mubr.bf16.mxu1 %v1588_v56 }
  0x5b   : > { %463 = vperm.xlu1 %1545, %v305_v9   ;;  %458 = vperm.xlu0 %1544, %v304_v10  }
  0x60   : > { %787 = vmatmul.mubr.bf16.gmra.mxu0 %v1590_v59  ;;  %851 = vmatmul.mubr.bf16.gmra.mxu1 %v1591_v60 }
  0x61   : > { %794 = vmatprep.mubr.bf16.mxu0 %v1592_v63  ;;  %858 = vmatprep.mubr.bf16.mxu1 %v1594_v0 }
  0x68   : > { %795 = vmatmul.mubr.bf16.gmra.mxu0 %v1596_v3  ;;  %859 = vmatmul.mubr.bf16.gmra.mxu1 %v1597_v4 }
  0x69   : > { %802 = vmatprep.mubr.bf16.mxu0 %v1598_v7  ;;  %866 = vmatprep.mubr.bf16.mxu1 %v1600_v8 }
  0x70   : > { %803 = vmatmul.mubr.bf16.gmra.mxu0 %v1602_v11  ;;  %867 = vmatmul.mubr.bf16.gmra.mxu1 %v1603_v12 }
  0x71   : > { %810 = vmatprep.mubr.bf16.mxu0 %v1604_v13  ;;  %874 = vmatprep.mubr.bf16.mxu1 %v1606_v14 }
  0x78   : > { %811 = vmatmul.mubr.bf16.gmra.mxu0 %v1608_v15  ;;  %875 = vmatmul.mubr.bf16.gmra.mxu1 %v1609_v16 }
  0x99   : > { %v309_v17 = vpop.permute.xlu0 %308  ;;  %v319_v18 = vpop.permute.xlu1 %318 }
  0x9e   : > { %v314_v19 = vpop.permute.xlu0 %313  ;;  %v1919_v20 = vpop.permute.xlu1 %323 }
  0xa2   : > { %v1921_v21 = vpop.permute.xlu0 %328  ;;  %v1923_v22 = vpop.permute.xlu1 %333 }
  0xa6   : > { %v1925_v23 = vpop.permute.xlu0 %338  ;;  %v1927_v24 = vpop.permute.xlu1 %343 }
  0xaa   : > { %v1929_v25 = vpop.permute.xlu0 %348  ;;  %v1931_v26 = vpop.permute.xlu1 %353 }
  0xae   : > { %v1933_v27 = vpop.permute.xlu0 %358  ;;  %v1935_v28 = vpop.permute.xlu1 %363 }
  0xb2   : > { %v1937_v29 = vpop.permute.xlu0 %368  ;;  %v1940_v30 = vpop.permute.xlu1 %373 }
  0xb6   : > { %v1942_v32 = vpop.permute.xlu0 %378  ;;  %v1944_v36 = vpop.permute.xlu1 %383 }
  0xba   : > { %v389_v44 = vpop.permute.xlu0 %388  ;;  %v394_v49 = vpop.permute.xlu1 %393 }
  0xbe   : > { %v399_v4 = vpop.permute.xlu0 %398  ;;  %v404_v11 = vpop.permute.xlu1 %403 }
 0x100   : > { %v1405_v33 = vpop.f32.mrf.mxu0  ;;  %v1453_v34 = vpop.f32.mrf.mxu1 }
 0x102   : > { %v1406_v38 = vpop.f32.mrf.mxu0  ;;  %v1454_v39 = vpop.f32.mrf.mxu1 }
 0x103   : > { %v1407_v40 = vadd.f32 %v1406_v38, %v1405_v33  ;;  %v1455_v41 = vadd.f32 %v1454_v39, %v1453_v34 }
 0x104   : > { %v1408_v42 = vpop.f32.mrf.mxu0  ;;  %v1456_v43 = vpop.f32.mrf.mxu1 }
 0x105   : > { %v757_v45 = vadd.f32 %v1407_v40, %v309_v17  ;;  %v821_v46 = vadd.f32 %v1455_v41, %v389_v44  ;;  %v409_v41 = vpop.permute.xlu0 %408 }
 0x106   : > { %v1409_v47 = vpop.f32.mrf.mxu0  ;;  %v1457_v48 = vpop.f32.mrf.mxu1 }
 0x107   : > { %v1410_v52 = vadd.f32 %v1409_v47, %v1408_v42  ;;  %v1458_v53 = vadd.f32 %v1457_v48, %v1456_v43  ;;  %v893_v58 = vmul.f32 %v1946_v51, %v757_v45  ;;  %v909_v59 = vmul.f32 %v1946_v51, %v821_v46  ;;  %v414_v47 = vpop.permute.xlu1 %413 }
 0x108   : > { %v1411_v54 = vpop.f32.mrf.mxu0  ;;  %v1459_v55 = vpop.f32.mrf.mxu1 }
 0x109   : > { %v760_v56 = vadd.f32 %v1410_v52, %v314_v19  ;;  %v824_v57 = vadd.f32 %v1458_v53, %v394_v49 }
 0x10a   : > { %v1412_v60 = vpop.f32.mrf.mxu0  ;;  %v1460_v61 = vpop.f32.mrf.mxu1 }
 0x10b   : > { %v894_v62 = vmul.f32 %v1946_v51, %v760_v56  ;;  %v910_v63 = vmul.f32 %v1946_v51, %v824_v57  ;;  %v1413_v0 = vadd.f32 %v1412_v60, %v1411_v54  ;;  %v1461_v1 = vadd.f32 %v1460_v61, %v1459_v55 }
 0x10c   : > { %v1414_v2 = vpop.f32.mrf.mxu0  ;;  %v1462_v3 = vpop.f32.mrf.mxu1 }
 0x10d   : > { %v1297_v5 = vpack.c.bf16 %v894_v62, %v893_v58  ;;  %v1337_v6 = vpack.c.bf16 %v910_v63, %v909_v59  ;;  %v765_v7 = vadd.f32 %v1413_v0, %v319_v18  ;;  %v829_v8 = vadd.f32 %v1461_v1, %v399_v4  ;;  %v419_v0 = vpop.permute.xlu0 %418 }
 0x10e   : > { %v1415_v9 = vpop.f32.mrf.mxu0  ;;  %v1463_v10 = vpop.f32.mrf.mxu1 }
 0x10f   : > { %1298 = vst [vmem:[%s1957_s7] sm:$0xff] %v1297_v5   ;;  %1381 = vst [vmem:[%s1957_s7 + $0x40] sm:$0xff] %v1337_v6   ;;  %v1416_v12 = vadd.f32 %v1415_v9, %v1414_v2  ;;  %v1464_v13 = vadd.f32 %v1463_v10, %v1462_v3  ;;  %v895_v19 = vmul.f32 %v1946_v51, %v765_v7  ;;  %v424_v6 = vpop.permute.xlu1 %423 }
 0x110   : > { %v1417_v14 = vpop.f32.mrf.mxu0  ;;  %v1465_v15 = vpop.f32.mrf.mxu1  ;;  %v911_v31 = vmul.f32 %v1946_v51, %v829_v8 }
 0x111   : > { %v768_v16 = vadd.f32 %v1416_v12, %v1919_v20  ;;  %v832_v17 = vadd.f32 %v1464_v13, %v404_v11 }
 0x112   : > { %v1418_v33 = vpop.f32.mrf.mxu0  ;;  %v1466_v18 = vpop.f32.mrf.mxu1 }
 0x113   : > { %v896_v34 = vmul.f32 %v1946_v51, %v768_v16  ;;  %v912_v35 = vmul.f32 %v1946_v51, %v832_v17  ;;  %v1419_v37 = vadd.f32 %v1418_v33, %v1417_v14  ;;  %v1467_v38 = vadd.f32 %v1466_v18, %v1465_v15 }
 0x114   : > { %v1420_v39 = vpop.f32.mrf.mxu0  ;;  %v1468_v40 = vpop.f32.mrf.mxu1 }
 0x115   : > { %v1302_v42 = vpack.c.bf16 %v896_v34, %v895_v19  ;;  %v1342_v20 = vpack.c.bf16 %v912_v35, %v911_v31  ;;  %v773_v43 = vadd.f32 %v1419_v37, %v1921_v21  ;;  %v837_v44 = vadd.f32 %v1467_v38, %v409_v41  ;;  %v429_v34 = vpop.permute.xlu0 %428  ;;  %v434_v41 = vpop.permute.xlu1 %433 }
 0x116   : > { %v1421_v45 = vpop.f32.mrf.mxu0  ;;  %v1469_v46 = vpop.f32.mrf.mxu1 }
 0x117   : > { %1374 = vst [vmem:[%s1957_s7 + $0x8] sm:$0xff] %v1302_v42   ;;  %1382 = vst [vmem:[%s1957_s7 + $0x48] sm:$0xff] %v1342_v20   ;;  %v1422_v48 = vadd.f32 %v1421_v45, %v1420_v39  ;;  %v1470_v49 = vadd.f32 %v1469_v46, %v1468_v40  ;;  %v897_v55 = vmul.f32 %v1946_v51, %v773_v43 }
 0x118   : > { %v1423_v50 = vpop.f32.mrf.mxu0  ;;  %v1471_v52 = vpop.f32.mrf.mxu1  ;;  %v913_v56 = vmul.f32 %v1946_v51, %v837_v44 }
 0x119   : > { %v776_v53 = vadd.f32 %v1422_v48, %v1923_v22  ;;  %v840_v54 = vadd.f32 %v1470_v49, %v414_v47 }
 0x11a   : > { %v1424_v57 = vpop.f32.mrf.mxu0  ;;  %v1472_v21 = vpop.f32.mrf.mxu1 }
 0x11b   : > { %v898_v58 = vmul.f32 %v1946_v51, %v776_v53  ;;  %v914_v59 = vmul.f32 %v1946_v51, %v840_v54  ;;  %v1425_v60 = vadd.f32 %v1424_v57, %v1423_v50  ;;  %v1473_v61 = vadd.f32 %v1472_v21, %v1471_v52  ;;  %v439_v57 = vpop.permute.xlu0 %438 }
 0x11c   : > { %v1426_v62 = vpop.f32.mrf.mxu0  ;;  %v1474_v63 = vpop.f32.mrf.mxu1 }
 0x11d   : > { %v1307_v1 = vpack.c.bf16 %v898_v58, %v897_v55  ;;  %v1347_v22 = vpack.c.bf16 %v914_v59, %v913_v56  ;;  %v781_v2 = vadd.f32 %v1425_v60, %v1925_v23  ;;  %v845_v3 = vadd.f32 %v1473_v61, %v419_v0 }
 0x11e   : > { %v1427_v4 = vpop.f32.mrf.mxu0  ;;  %v1475_v5 = vpop.f32.mrf.mxu1 }
 0x11f   : > { %1375 = vst [vmem:[%s1957_s7 + $0x10] sm:$0xff] %v1307_v1   ;;  %1383 = vst [vmem:[%s1957_s7 + $0x50] sm:$0xff] %v1347_v22   ;;  %v1428_v7 = vadd.f32 %v1427_v4, %v1426_v62  ;;  %v1476_v8 = vadd.f32 %v1475_v5, %v1474_v63  ;;  %v899_v13 = vmul.f32 %v1946_v51, %v781_v2  ;;  %v444_v62 = vpop.permute.xlu1 %443 }
 0x120   : > { %v1429_v9 = vpop.f32.mrf.mxu0  ;;  %v1477_v10 = vpop.f32.mrf.mxu1  ;;  %v915_v14 = vmul.f32 %v1946_v51, %v845_v3 }
 0x121   : > { %v784_v11 = vadd.f32 %v1428_v7, %v1927_v24  ;;  %v848_v12 = vadd.f32 %v1476_v8, %v424_v6 }
 0x122   : > { %v1430_v15 = vpop.f32.mrf.mxu0  ;;  %v1478_v23 = vpop.f32.mrf.mxu1 }
 0x123   : > { %v900_v16 = vmul.f32 %v1946_v51, %v784_v11  ;;  %v916_v17 = vmul.f32 %v1946_v51, %v848_v12  ;;  %v1431_v19 = vadd.f32 %v1430_v15, %v1429_v9  ;;  %v1479_v31 = vadd.f32 %v1478_v23, %v1477_v10 }
 0x124   : > { %v1432_v33 = vpop.f32.mrf.mxu0  ;;  %v1480_v18 = vpop.f32.mrf.mxu1 }
 0x125   : > { %v1312_v35 = vpack.c.bf16 %v900_v16, %v899_v13  ;;  %v1352_v24 = vpack.c.bf16 %v916_v17, %v915_v14  ;;  %v789_v37 = vadd.f32 %v1431_v19, %v1929_v25  ;;  %v853_v38 = vadd.f32 %v1479_v31, %v429_v34  ;;  %v449_v13 = vpop.permute.xlu0 %448  ;;  %v454_v19 = vpop.permute.xlu1 %453 }
 0x126   : > { %v1433_v39 = vpop.f32.mrf.mxu0  ;;  %v1481_v40 = vpop.f32.mrf.mxu1 }
 0x127   : > { %1376 = vst [vmem:[%s1957_s7 + $0x18] sm:$0xff] %v1312_v35   ;;  %1384 = vst [vmem:[%s1957_s7 + $0x58] sm:$0xff] %v1352_v24   ;;  %v1434_v42 = vadd.f32 %v1433_v39, %v1432_v33  ;;  %v1482_v20 = vadd.f32 %v1481_v40, %v1480_v18  ;;  %v901_v47 = vmul.f32 %v1946_v51, %v789_v37 }
 0x128   : > { %v1435_v43 = vpop.f32.mrf.mxu0  ;;  %v1483_v44 = vpop.f32.mrf.mxu1  ;;  %v917_v48 = vmul.f32 %v1946_v51, %v853_v38 }
 0x129   : > { %v792_v45 = vadd.f32 %v1434_v42, %v1931_v26  ;;  %v856_v46 = vadd.f32 %v1482_v20, %v434_v41 }
 0x12a   : > { %v1436_v49 = vpop.f32.mrf.mxu0  ;;  %v1484_v25 = vpop.f32.mrf.mxu1 }
 0x12b   : > { %v902_v50 = vmul.f32 %v1946_v51, %v792_v45  ;;  %v918_v52 = vmul.f32 %v1946_v51, %v856_v46  ;;  %v1437_v53 = vadd.f32 %v1436_v49, %v1435_v43  ;;  %v1485_v54 = vadd.f32 %v1484_v25, %v1483_v44  ;;  %v459_v45 = vpop.permute.xlu0 %458 }
 0x12c   : > { %v1438_v55 = vpop.f32.mrf.mxu0  ;;  %v1486_v56 = vpop.f32.mrf.mxu1 }
 0x12d   : > { %v1317_v21 = vpack.c.bf16 %v902_v50, %v901_v47  ;;  %v1357_v26 = vpack.c.bf16 %v918_v52, %v917_v48  ;;  %v797_v58 = vadd.f32 %v1437_v53, %v1933_v27  ;;  %v861_v59 = vadd.f32 %v1485_v54, %v439_v57  ;;  %v464_v53 = vpop.permute.xlu1 %463 }
 0x12e   : > { %v1439_v60 = vpop.f32.mrf.mxu0  ;;  %v1487_v61 = vpop.f32.mrf.mxu1 }
 0x12f   : > { %1377 = vst [vmem:[%s1957_s7 + $0x20] sm:$0xff] %v1317_v21   ;;  %1385 = vst [vmem:[%s1957_s7 + $0x60] sm:$0xff] %v1357_v26   ;;  %v1440_v63 = vadd.f32 %v1439_v60, %v1438_v55  ;;  %v1488_v0 = vadd.f32 %v1487_v61, %v1486_v56  ;;  %v903_v4 = vmul.f32 %v1946_v51, %v797_v58 }
 0x130   : > { %v1441_v1 = vpop.f32.mrf.mxu0  ;;  %v1489_v22 = vpop.f32.mrf.mxu1  ;;  %v919_v5 = vmul.f32 %v1946_v51, %v861_v59 }
 0x131   : > { %v800_v2 = vadd.f32 %v1440_v63, %v1935_v28  ;;  %v864_v3 = vadd.f32 %v1488_v0, %v444_v62 }
 0x132   : > { %v1442_v6 = vpop.f32.mrf.mxu0  ;;  %v1490_v27 = vpop.f32.mrf.mxu1 }
 0x133   : > { %v904_v7 = vmul.f32 %v1946_v51, %v800_v2  ;;  %v920_v8 = vmul.f32 %v1946_v51, %v864_v3  ;;  %v1443_v9 = vadd.f32 %v1442_v6, %v1441_v1  ;;  %v1491_v10 = vadd.f32 %v1490_v27, %v1489_v22 }
 0x134   : > { %v1444_v11 = vpop.f32.mrf.mxu0  ;;  %v1492_v12 = vpop.f32.mrf.mxu1 }
 0x135   : > { %v1322_v14 = vpack.c.bf16 %v904_v7, %v903_v4  ;;  %v1362_v28 = vpack.c.bf16 %v920_v8, %v919_v5  ;;  %v805_v15 = vadd.f32 %v1443_v9, %v1937_v29  ;;  %v869_v23 = vadd.f32 %v1491_v10, %v449_v13 }
 0x136   : > { %v1445_v16 = vpop.f32.mrf.mxu0  ;;  %v1493_v17 = vpop.f32.mrf.mxu1 }
 0x137   : > { %1378 = vst [vmem:[%s1957_s7 + $0x28] sm:$0xff] %v1322_v14   ;;  %1386 = vst [vmem:[%s1957_s7 + $0x68] sm:$0xff] %v1362_v28   ;;  %v1446_v31 = vadd.f32 %v1445_v16, %v1444_v11  ;;  %v1494_v33 = vadd.f32 %v1493_v17, %v1492_v12  ;;  %v905_v37 = vmul.f32 %v1946_v51, %v805_v15 }
 0x138   : > { %v1447_v18 = vpop.f32.mrf.mxu0  ;;  %v1495_v34 = vpop.f32.mrf.mxu1  ;;  %v921_v38 = vmul.f32 %v1946_v51, %v869_v23 }
 0x139   : > { %v808_v35 = vadd.f32 %v1446_v31, %v1940_v30  ;;  %v872_v24 = vadd.f32 %v1494_v33, %v454_v19 }
 0x13a   : > { %v1448_v29 = vpop.f32.mrf.mxu0  ;;  %v1496_v39 = vpop.f32.mrf.mxu1 }
 0x13b   : > { %v906_v40 = vmul.f32 %v1946_v51, %v808_v35  ;;  %v922_v41 = vmul.f32 %v1946_v51, %v872_v24  ;;  %v1449_v42 = vadd.f32 %v1448_v29, %v1447_v18  ;;  %v1497_v20 = vadd.f32 %v1496_v39, %v1495_v34 }
 0x13c   : > { %v1450_v43 = vpop.f32.mrf.mxu0  ;;  %v1498_v44 = vpop.f32.mrf.mxu1 }
 0x13d   : > { %v1327_v46 = vpack.c.bf16 %v906_v40, %v905_v37  ;;  %v1367_v30 = vpack.c.bf16 %v922_v41, %v921_v38  ;;  %v813_v49 = vadd.f32 %v1449_v42, %v1942_v32  ;;  %v877_v25 = vadd.f32 %v1497_v20, %v459_v45 }
 0x13e   : > { %v1451_v47 = vpop.f32.mrf.mxu0  ;;  %v1499_v48 = vpop.f32.mrf.mxu1 }
 0x13f   : > { %1379 = vst [vmem:[%s1957_s7 + $0x30] sm:$0xff] %v1327_v46   ;;  %1387 = vst [vmem:[%s1957_s7 + $0x70] sm:$0xff] %v1367_v30   ;;  %v1452_v50 = vadd.f32 %v1451_v47, %v1450_v43  ;;  %v1500_v52 = vadd.f32 %v1499_v48, %v1498_v44  ;;  %v907_v56 = vmul.f32 %v1946_v51, %v813_v49 }
 0x140   : > { %v923_v57 = vmul.f32 %v1946_v51, %v877_v25 }
 0x141   : > { %v816_v54 = vadd.f32 %v1452_v50, %v1944_v36  ;;  %v880_v55 = vadd.f32 %v1500_v52, %v464_v53 }
 0x143   : > { %v908_v21 = vmul.f32 %v1946_v51, %v816_v54  ;;  %v924_v26 = vmul.f32 %v1946_v51, %v880_v55 }
 0x145   : > { %v1332_v58 = vpack.c.bf16 %v908_v21, %v907_v56  ;;  %v1372_v59 = vpack.c.bf16 %v924_v26, %v923_v57 }
 0x147   : > { %1380 = vst [vmem:[%s1957_s7 + $0x38] sm:$0xff] %v1332_v58   ;;  %1388 = vst [vmem:[%s1957_s7 + $0x78] sm:$0xff] %v1372_v59  }
 0x148 PF: > { %s20_s22 = sadd.s32 1, %s1646_s22   ;;  %s2030_s20 = smov %s1642_s21 }
 0x149   : > { %p17_p10 = scmp.ge.s32.totalorder %s20_s22, 4   ;;  %s2031_s21 = smov %s2033_s0 }
 0x14b   :  { %19 = sbr.rel (!%p17_p10) target bundleno = 17 (0x11), region = 62 }

</bundles_post_ra>
